<compile_context>
chip_gen: v6e
topology: v6e:2x2x1
jax: 0.10.0
libtpu: 0.0.40
codegen_flags: <defaults>
</compile_context>

<pallas_src>
import functools

import jax
import jax.numpy as jnp
from jax.experimental import pallas as pl
from jax.experimental.pallas import tpu as pltpu


def _round_up(x, m):
    return ((x + m - 1) // m) * m


def _projection_kernel(x_ref, w_ref, b_ref, o_ref):
    # x_ref : (TM, Ep)   w_ref : (Pp, Ep)   b_ref : (1, Pp)   o_ref : (TM, Pp)
    # Contract on E (axis 1 of both operands) -> (TM, Pp), fp32 accumulation.
    acc = jax.lax.dot_general(
        x_ref[...],
        w_ref[...],
        dimension_numbers=(((1,), (1,)), ((), ())),
        preferred_element_type=jnp.float32,
    )
    o_ref[...] = (acc + b_ref[...].astype(jnp.float32)).astype(o_ref.dtype)


@functools.partial(jax.jit, static_argnames=("block_m", "compute_dtype"))
def projection_head(x, weight, bias, *, block_m=256, compute_dtype=jnp.bfloat16):
    """y = x @ weight.T + bias  (semantics of nn.Linear forward).

    x:      (batch, embedding_dim)
    weight: (projection_dim, embedding_dim)   -- PyTorch layout, NOT transposed
    bias:   (projection_dim,)
    """
    batch, emb = x.shape
    proj = weight.shape[0]
    out_dtype = x.dtype

    # Pad to TPU-friendly shapes: lanes (last dim) -> x128, sublanes -> x8.
    ep = _round_up(emb, 128)
    pp = _round_up(proj, 128)

    bp = _round_up(batch, 8)
    if bp <= block_m:
        tm = bp                      # whole (padded) batch in one tile
    else:
        tm = block_m
        bp = _round_up(batch, tm)    # make the batch tile divide evenly

    # Zero padding is exact: extra E columns contribute 0 to the contraction,
    # extra P columns / batch rows are sliced off below.
    x_p = jnp.zeros((bp, ep), dtype=compute_dtype).at[:batch, :emb].set(
        x.astype(compute_dtype))
    w_p = jnp.zeros((pp, ep), dtype=compute_dtype).at[:proj, :emb].set(
        weight.astype(compute_dtype))
    b_p = jnp.zeros((1, pp), dtype=jnp.float32).at[0, :proj].set(
        bias.astype(jnp.float32))

    grid = (bp // tm,)

    out_padded = pl.pallas_call(
        _projection_kernel,
        out_shape=jax.ShapeDtypeStruct((bp, pp), out_dtype),
        grid=grid,
        in_specs=[
            pl.BlockSpec((tm, ep), lambda i: (i, 0)),   # x: tiled over batch
            pl.BlockSpec((pp, ep), lambda i: (0, 0)),   # weight: VMEM-resident
            pl.BlockSpec((1, pp), lambda i: (0, 0)),    # bias:   VMEM-resident
        ],
        out_specs=pl.BlockSpec((tm, pp), lambda i: (i, 0)),
        compiler_params=pltpu.CompilerParams(
            dimension_semantics=("parallel",),
            vmem_limit_bytes=64 * 1024 * 1024,
        ),
    )(x_p, w_p, b_p)

    return out_padded[:batch, :proj]


if __name__ == "__main__":
    # Small shapes consistent with the module: batch=8, embedding_dim=32,
    # projection_dim=64.
    batch, embedding_dim, projection_dim = 8, 32, 64

    key = jax.random.PRNGKey(0)
    kx, kw, kb = jax.random.split(key, 3)

    x = jax.random.normal(kx, (batch, embedding_dim), dtype=jnp.float32)
    # PyTorch-shaped Linear params: W (out, in), b (out,)
    weight = jax.random.normal(kw, (projection_dim, embedding_dim),
                               dtype=jnp.float32) * (embedding_dim ** -0.5)
    bias = jax.random.normal(kb, (projection_dim,), dtype=jnp.float32) * 0.01

    out = projection_head(x, weight, bias)
    out = jax.block_until_ready(out)

    # Reference (same semantics as nn.Linear forward). Tolerance loosened for
    # bf16 operands (fp32 accumulation keeps the error small).
    ref = x @ weight.T + bias
    assert out.shape == (batch, projection_dim)
    assert jnp.allclose(out, ref, atol=3e-2, rtol=3e-2), (
        float(jnp.max(jnp.abs(out - ref))))

    # Also sanity-check the exact fp32 path.
    out_f32 = jax.block_until_ready(
        projection_head(x, weight, bias, compute_dtype=jnp.float32))
    assert jnp.allclose(out_f32, ref, atol=1e-5, rtol=1e-5)

    print("KERNEL_OK")
</pallas_src>

<mosaic_0001>
module attributes {stable_mosaic.version = 11 : i64} {
  func.func @_projection_kernel(%arg0: i32, %arg1: memref<8x128xbf16, #tpu.memory_space<vmem>>, %arg2: memref<128x128xbf16, #tpu.memory_space<vmem>>, %arg3: memref<1x128xf32, #tpu.memory_space<vmem>>, %arg4: memref<8x128xf32, #tpu.memory_space<vmem>>) attributes {dimension_semantics = [#tpu.dimension_semantics<parallel>], iteration_bounds = array<i64: 1>, scalar_prefetch = 0 : i64, scratch_operands = 0 : i64, tpu.core_type = #tpu.core_type<tc>, window_params = [{transform_indices = @transform_0, window_bounds = array<i64: 8, 128>}, {pipeline_mode = #tpu.pipeline_mode<synchronous>, transform_indices = @transform_1, window_bounds = array<i64: 128, 128>}, {pipeline_mode = #tpu.pipeline_mode<synchronous>, transform_indices = @transform_2, window_bounds = array<i64: 1, 128>}, {transform_indices = @transform_3, window_bounds = array<i64: 8, 128>}]} {
    %c0 = arith.constant 0 : index
    %c0_0 = arith.constant 0 : index
    %0 = vector.load %arg1[%c0, %c0_0] : memref<8x128xbf16, #tpu.memory_space<vmem>>, vector<8x128xbf16>
    %c0_1 = arith.constant 0 : index
    %c0_2 = arith.constant 0 : index
    %1 = vector.load %arg2[%c0_1, %c0_2] : memref<128x128xbf16, #tpu.memory_space<vmem>>, vector<128x128xbf16>
    %cst = arith.constant dense<0.000000e+00> : vector<8x128xf32>
    %2 = tpu.matmul %0, %1, %cst {dimension_numbers = #tpu.dot_dimension_numbers<[1], [1], [0], [0], [0, 0, 1, 0], [], []>} : vector<8x128xbf16>, vector<128x128xbf16>, vector<8x128xf32> -> vector<8x128xf32>
    %c0_3 = arith.constant 0 : index
    %c0_4 = arith.constant 0 : index
    %3 = vector.load %arg3[%c0_3, %c0_4] : memref<1x128xf32, #tpu.memory_space<vmem>>, vector<1x128xf32>
    %4 = vector.broadcast %3 : vector<1x128xf32> to vector<8x128xf32>
    %5 = arith.addf %2, %4 : vector<8x128xf32>
    %c0_5 = arith.constant 0 : index
    %c0_6 = arith.constant 0 : index
    %6 = vector.load %arg4[%c0_5, %c0_6] : memref<8x128xf32, #tpu.memory_space<vmem>>, vector<8x128xf32>
    tpu.vector_store %arg4[%c0_5, %c0_6], %5 {strides = array<i32>} : memref<8x128xf32, #tpu.memory_space<vmem>>, vector<8x128xf32>,
    return
  }
  func.func @transform_0(%arg0: i32) -> (i32, i32) {
    %c0_i32 = arith.constant 0 : i32
    %c0_i32_0 = arith.constant 0 : i32
    return %arg0, %c0_i32 : i32, i32
  }
  func.func @transform_1(%arg0: i32) -> (i32, i32) {
    %c0_i32 = arith.constant 0 : i32
    %c0_i32_0 = arith.constant 0 : i32
    %c0_i32_1 = arith.constant 0 : i32
    return %c0_i32, %c0_i32_0 : i32, i32
  }
  func.func @transform_2(%arg0: i32) -> (i32, i32) {
    %c0_i32 = arith.constant 0 : i32
    %c0_i32_0 = arith.constant 0 : i32
    %c0_i32_1 = arith.constant 0 : i32
    return %c0_i32, %c0_i32_0 : i32, i32
  }
  func.func @transform_3(%arg0: i32) -> (i32, i32) {
    %c0_i32 = arith.constant 0 : i32
    %c0_i32_0 = arith.constant 0 : i32
    return %arg0, %c0_i32 : i32, i32
  }
}

</mosaic_0001>

<bundles_post_ra>
// kernel: projection_head.1
= control target key start
LH: loop header
LB: loop body
LE: loop exit
PB: predicated region body
PF: predicated region fallthrough
CT: control target
= control target key end

     0   :  { %v214_v1 = vmov 0.0   ;;  %vm215_vm0 = vmmov 0   ;;  %s270_s0 = inlined_call_operand.vmem [shape: bf16[8,128], index: 0, kind: input, shape index: {}]   ;;  %s271_s1 = inlined_call_operand.vmem [shape: bf16[128,128], index: 1, kind: input, shape index: {}]   ;;  %s272_s2 = inlined_call_operand.vmem [shape: f32[1,128], index: 2, kind: input, shape index: {}]   ;;  %s273_s3 = inlined_call_operand.hbm [shape: f32[8,128], index: 3, kind: output, shape index: {}]  }
   0x1   :  { %v184_v0 = vld [vmem:[%s271_s1 + $0x38] sm:$0xff]   ;;  %161 = vmatprep.subr.bf16.mxu0 %v214_v1  ;;  %177 = vmatprep.mubr.msk.bf16.mxu0 %vm215_vm0, %v214_v1  ;;  %v185_v2 = vld [vmem:[%s271_s1 + $0x30] sm:$0xff]  }
   0x2   :  { %162 = vmatpush3.bf16.xpose.msra.mxu0 %v184_v0 }
   0x3   :  { %163 = vmatprep.subr.bf16.mxu0 %v214_v1 }
   0x4   :  { %8 = vsyncpa [#allocation3], 0  ;;  %v186_v3 = vld [vmem:[%s271_s1 + $0x28] sm:$0xff]   ;;  %v187_v4 = vld [vmem:[%s271_s1 + $0x20] sm:$0xff]   ;;  %s216_s5 = smov [#allocation2]  }
   0x5   :  { %v188_v5 = vld [vmem:[%s271_s1 + $0x18] sm:$0xff]   ;;  %v189_v6 = vld [vmem:[%s271_s1 + $0x10] sm:$0xff]   ;;  %v190_v7 = vld [vmem:[%s271_s1 + $0x8] sm:$0xff]   ;;  %s135_s6 = sshll.u32 %s216_s5, 4  ;;  %s136_s6 = int_to_ptr.vmem [resolvable:$true] %s135_s6 }
   0x6   :  { %v191_v8 = vld [vmem:[%s271_s1] sm:$0xff]   ;;  %s192_s7 = scalar_lea.vmem %s136_s6, 128  ;;  %p197_p1 = scmp.lt.s32.totalorder %s136_s6, %s136_s6 }
   0x7   :  { %v16_v9 = vld [vmem:[%s270_s0] sm:$0xf]  ;;  %p193_p0 = scmp.ne.s32.totalorder %s136_s6, %s192_s7  ;;  %p198_p2 = scmp.lt.s32.totalorder %s192_s7, %s192_s7 }
   0x8   :  { %v143_v10 = vld [vmem:[%s272_s2] ss:$0 sm:$0xff] }
   0x9   :  { %p199_p3 = por %p198_p2, %p197_p1 }
   0xa   :  { %164 = vmatpush3.bf16.xpose.msra.mxu0 %v185_v2 }
   0xb   :  { %165 = vmatprep.subr.bf16.mxu0 %v214_v1  ;;  %p200_p4 = pnand %p199_p3, %p193_p0 }
  0x12   :  { %166 = vmatpush3.bf16.xpose.msra.mxu0 %v186_v3 }
  0x13   :  { %167 = vmatprep.subr.bf16.mxu0 %v214_v1 }
  0x1a   :  { %168 = vmatpush3.bf16.xpose.msra.mxu0 %v187_v4 }
  0x1b   :  { %169 = vmatprep.subr.bf16.mxu0 %v214_v1 }
  0x22   :  { %170 = vmatpush3.bf16.xpose.msra.mxu0 %v188_v5 }
  0x23   :  { %171 = vmatprep.subr.bf16.mxu0 %v214_v1 }
  0x2a   :  { %172 = vmatpush3.bf16.xpose.msra.mxu0 %v189_v6 }
  0x2b   :  { %173 = vmatprep.subr.bf16.mxu0 %v214_v1 }
  0x32   :  { %174 = vmatpush3.bf16.xpose.msra.mxu0 %v190_v7 }
  0x33   :  { %175 = vmatprep.subr.bf16.mxu0 %v214_v1 }
  0x3a   :  { %176 = vmatpush3.bf16.xpose.msra.mxu0 %v191_v8 }
  0x41   :  { %178 = vmatmul.mubr.bf16.vlgmr.msra.gmra.mxu0 %v16_v9 }
 0x101   :  { %v122_v11 = vpop.f32.mrf.mxu0 }
 0x102   :  { %v123_v12 = vadd.f32 %v143_v10, %v122_v11 }
 0x103   :  { %v179_v13 = vpop.f32.mrf.mxu0 }
 0x104   :  { %128 = vst [vmem:[#allocation2] sm:$0xff] %v123_v12 }
 0x105   :  { %v125_v14 = vpop.f32.mrf.mxu0 }
 0x106   :  { %203 = shalt.err (!%p200_p4)
}
 0x107   :  { %138 = dma.vmem_to_hbm [thread:$0]  %s136_s6, 128, %s273_s3, [#allocation3]   ;;  %v180_v15 = vpop.f32.mrf.mxu0 }
 0x108   :  { %212 = dma.done.wait [#allocation3], 128  }
 0x109   :  { %213 = vsyncadd [#allocation3], 4294967168 }
 0x10a   :  { %142 = vsyncpa [#allocation3], 1 }

</bundles_post_ra>
